<compile_context>
chip_gen: v7x
topology: tpu7x:2x2x1
jax: 0.10.0
libtpu: 0.0.40
codegen_flags: <defaults>
</compile_context>

<pallas_src>
import jax
import jax.numpy as jnp
from jax import lax
from jax.experimental import pallas as pl
from jax.experimental.pallas import tpu as pltpu

# ---- module hyperparameters (from the PyTorch script) ----
BATCH_SIZE = 5
HIDDEN_SIZE = 10
INPUT_SIZE = 1
NUM_LAYERS = 1          # single layer supported (as in the module)
OUTPUT_SIZE = 1
SEQUENCE_LENGTH = 10


def _rnn_kernel(x_ref, h0_ref, p_ref, out_ref):
    # x_ref  : (seq, batch)            VMEM  (lane-dense, size-1 input dim dropped)
    # h0_ref : (batch, hidden)         VMEM
    # p_ref  : (hidden+4, hidden)      VMEM  packed parameter slab:
    #            rows [0, hidden)      -> W_hh^T
    #            row  hidden           -> W_ih^T  (input_size == 1 -> single row)
    #            row  hidden+1         -> b_ih + b_hh
    #            row  hidden+2         -> W_fc    (output_size == 1 -> single row)
    #            row  hidden+3         -> b_fc    (replicated across the row)
    # out_ref: (batch, seq)            VMEM  (lane-dense, trailing 1 added by wrapper)
    seq, batch = x_ref.shape
    hidden = h0_ref.shape[1]

    w_hh = p_ref[0:hidden, :]                       # (hidden, hidden)  == W_hh^T
    w_ih = p_ref[hidden:hidden + 1, :]              # (1, hidden)       == W_ih^T
    bias = p_ref[hidden + 1:hidden + 2, :]          # (1, hidden)       == b_ih + b_hh
    w_fc = p_ref[hidden + 2:hidden + 3, :]          # (1, hidden)
    b_fc = p_ref[hidden + 3:hidden + 4, 0:1]        # (1, 1)

    # ---- input projection hoisted out of the recurrence (pure VPU; input_size == 1) ----
    # Laid out (seq, batch, hidden) so the per-step read below is leading-axis indexing.
    x = x_ref[...]                                  # (seq, batch)
    x_proj = x[:, :, None] * w_ih[None, :, :] + bias[None, :, :]   # (seq, batch, hidden)

    # ---- serial recurrence, fully unrolled; hidden states stay vreg-resident ----
    h = h0_ref[...]                                 # (batch, hidden)
    hs = []
    for t in range(seq):
        h = jnp.tanh(x_proj[t] +
                     jnp.dot(h, w_hh, preferred_element_type=jnp.float32))
        hs.append(h)

    # ---- FC head applied once, off the serial chain (output_size == 1 -> lane reduce) ----
    hs_all = jnp.stack(hs, axis=0)                  # (seq, batch, hidden)
    y = jnp.sum(hs_all * w_fc[None, :, :], axis=-1) + b_fc     # (seq, batch)
    out_ref[...] = jnp.transpose(y, (1, 0)).astype(out_ref.dtype)   # (batch, seq)


def pack_params(w_ih_t, w_hh_t, b_ih, b_hh, w_fc, b_fc):
    """Pack all RNN + FC parameters into one (hidden+4, hidden) f32 slab."""
    hidden = w_hh_t.shape[0]
    assert w_ih_t.shape[0] == 1 and w_fc.shape[0] == 1, \
        "slab packing assumes input_size == 1 and output_size == 1"
    rows = [
        w_hh_t,                                                  # (hidden, hidden)
        w_ih_t.reshape(1, hidden),                               # (1, hidden)
        (b_ih + b_hh).reshape(1, hidden),                        # (1, hidden)
        w_fc.reshape(1, hidden),                                 # (1, hidden)
        jnp.broadcast_to(jnp.reshape(b_fc, (1, 1)), (1, hidden)),  # (1, hidden)
    ]
    return jnp.concatenate(rows, axis=0).astype(jnp.float32)    # (hidden+4, hidden)


def simple_rnn_forward(x_bsf, h0, packed_params):
    """x_bsf: (batch, seq, 1) float32, batch_first like the PyTorch module."""
    batch, seq, _ = x_bsf.shape
    hidden = h0.shape[-1]

    # Lane-dense input: drop the size-1 feature dim, transpose to (seq, batch).
    x_sb = jnp.transpose(x_bsf[:, :, 0], (1, 0))                 # (seq, batch)

    vmem = pl.BlockSpec(memory_space=pltpu.MemorySpace.VMEM)
    flops = 2 * seq * batch * hidden * hidden + 4 * seq * batch * hidden
    bytes_accessed = 4 * (seq * batch + batch * hidden
                          + (hidden + 4) * hidden + batch * seq)
    y_bs = pl.pallas_call(
        _rnn_kernel,
        out_shape=jax.ShapeDtypeStruct((batch, seq), jnp.float32),
        in_specs=[vmem, vmem, vmem],
        out_specs=vmem,
        cost_estimate=pl.CostEstimate(flops=flops,
                                      transcendentals=seq * batch * hidden,
                                      bytes_accessed=bytes_accessed),
    )(x_sb, h0, packed_params)
    return y_bs[:, :, None]                                      # (batch, seq, 1)


def _reference_forward(x_bsf, h0, params):
    """Pure-JAX reference with identical semantics (silent sanity check)."""
    w_ih_t, w_hh_t, b_ih, b_hh, w_fc, b_fc = params

    def step(h, x_t):
        h_new = jnp.tanh(x_t @ w_ih_t + h @ w_hh_t + b_ih + b_hh)
        return h_new, h_new

    x_sbf = jnp.transpose(x_bsf, (1, 0, 2))
    _, hs = lax.scan(step, h0, x_sbf)                 # (seq, batch, hidden)
    y = hs @ w_fc.T + b_fc                            # (seq, batch, out)
    return jnp.transpose(y, (1, 0, 2))                # (batch, seq, out)


def init_params(key, input_size, hidden_size, output_size):
    # Deterministic uniform init, mirroring PyTorch's U(-1/sqrt(H), 1/sqrt(H)).
    k = 1.0 / jnp.sqrt(jnp.float32(hidden_size))
    ks = jax.random.split(key, 6)
    w_ih_t = jax.random.uniform(ks[0], (input_size, hidden_size), jnp.float32, -k, k)
    w_hh_t = jax.random.uniform(ks[1], (hidden_size, hidden_size), jnp.float32, -k, k)
    b_ih = jax.random.uniform(ks[2], (1, hidden_size), jnp.float32, -k, k)
    b_hh = jax.random.uniform(ks[3], (1, hidden_size), jnp.float32, -k, k)
    w_fc = jax.random.uniform(ks[4], (output_size, hidden_size), jnp.float32, -k, k)
    b_fc = jax.random.uniform(ks[5], (1, output_size), jnp.float32, -k, k)
    return (w_ih_t, w_hh_t, b_ih, b_hh, w_fc, b_fc)


if __name__ == "__main__":
    key = jax.random.PRNGKey(0)
    k_x, k_h, k_p = jax.random.split(key, 3)

    # Input consistent with the module: (batch, seq, input) = (5, 10, 1), float32.
    x = jax.random.normal(k_x, (BATCH_SIZE, SEQUENCE_LENGTH, INPUT_SIZE), jnp.float32)
    # The module draws h0 = torch.randn(num_layers, batch, hidden) each forward;
    # here it is a deterministic draw (num_layers == 1, so (batch, hidden)).
    h0 = jax.random.normal(k_h, (BATCH_SIZE, HIDDEN_SIZE), jnp.float32)

    raw_params = init_params(k_p, INPUT_SIZE, HIDDEN_SIZE, OUTPUT_SIZE)
    packed_params = pack_params(*raw_params)

    y = jax.block_until_ready(simple_rnn_forward(x, h0, packed_params))
    y_ref = jax.block_until_ready(_reference_forward(x, h0, raw_params))

    assert y.shape == (BATCH_SIZE, SEQUENCE_LENGTH, OUTPUT_SIZE)
    assert jnp.allclose(y, y_ref, atol=1e-5, rtol=1e-5)

    print("KERNEL_OK")
</pallas_src>

<mosaic_0001>
module attributes {stable_mosaic.version = 11 : i64} {
  func.func @_rnn_kernel(%arg0: memref<10x5xf32, #tpu.memory_space<vmem>>, %arg1: memref<5x10xf32, #tpu.memory_space<vmem>>, %arg2: memref<14x10xf32, #tpu.memory_space<vmem>>, %arg3: memref<5x10xf32, #tpu.memory_space<vmem>>) attributes {dimension_semantics = [], scalar_prefetch = 0 : i64, scratch_operands = 0 : i64, tpu.core_type = #tpu.core_type<tc>} {
    %c0 = arith.constant 0 : index
    %c0_0 = arith.constant 0 : index
    %0 = vector.load %arg2[%c0, %c0_0] : memref<14x10xf32, #tpu.memory_space<vmem>>, vector<10x10xf32>
    %c10 = arith.constant 10 : index
    %c0_1 = arith.constant 0 : index
    %1 = vector.load %arg2[%c10, %c0_1] : memref<14x10xf32, #tpu.memory_space<vmem>>, vector<1x10xf32>
    %c11 = arith.constant 11 : index
    %c0_2 = arith.constant 0 : index
    %2 = vector.load %arg2[%c11, %c0_2] : memref<14x10xf32, #tpu.memory_space<vmem>>, vector<1x10xf32>
    %c12 = arith.constant 12 : index
    %c0_3 = arith.constant 0 : index
    %3 = vector.load %arg2[%c12, %c0_3] : memref<14x10xf32, #tpu.memory_space<vmem>>, vector<1x10xf32>
    %c13 = arith.constant 13 : index
    %c0_4 = arith.constant 0 : index
    %4 = vector.load %arg2[%c13, %c0_4] : memref<14x10xf32, #tpu.memory_space<vmem>>, vector<1x1xf32>
    %c0_5 = arith.constant 0 : index
    %c0_6 = arith.constant 0 : index
    %5 = vector.load %arg0[%c0_5, %c0_6] : memref<10x5xf32, #tpu.memory_space<vmem>>, vector<10x5xf32>
    %6 = vector.shape_cast %5 : vector<10x5xf32> to vector<10x5x1xf32>
    %7 = vector.shape_cast %1 : vector<1x10xf32> to vector<1x1x10xf32>
    %8 = vector.broadcast %6 : vector<10x5x1xf32> to vector<10x5x10xf32>
    %9 = vector.broadcast %7 : vector<1x1x10xf32> to vector<10x5x10xf32>
    %10 = arith.mulf %8, %9 : vector<10x5x10xf32>
    %11 = vector.shape_cast %2 : vector<1x10xf32> to vector<1x1x10xf32>
    %12 = vector.broadcast %11 : vector<1x1x10xf32> to vector<10x5x10xf32>
    %13 = arith.addf %10, %12 : vector<10x5x10xf32>
    %c0_7 = arith.constant 0 : index
    %c0_8 = arith.constant 0 : index
    %14 = vector.load %arg1[%c0_7, %c0_8] : memref<5x10xf32, #tpu.memory_space<vmem>>, vector<5x10xf32>
    %15 = vector.extract_strided_slice %13 {offsets = [0, 0, 0], sizes = [1, 5, 10], strides = [1, 1, 1]} : vector<10x5x10xf32> to vector<1x5x10xf32>
    %16 = vector.shape_cast %15 : vector<1x5x10xf32> to vector<5x10xf32>
    %cst = arith.constant dense<0.000000e+00> : vector<5x10xf32>
    %17 = tpu.matmul %14, %0, %cst {dimension_numbers = #tpu.dot_dimension_numbers<[1], [0], [0], [1], [0, 0, 1, 1], [], []>} : vector<5x10xf32>, vector<10x10xf32>, vector<5x10xf32> -> vector<5x10xf32>
    %18 = arith.addf %16, %17 : vector<5x10xf32>
    %19 = math.tanh %18 : vector<5x10xf32>
    %20 = vector.extract_strided_slice %13 {offsets = [1, 0, 0], sizes = [1, 5, 10], strides = [1, 1, 1]} : vector<10x5x10xf32> to vector<1x5x10xf32>
    %21 = vector.shape_cast %20 : vector<1x5x10xf32> to vector<5x10xf32>
    %cst_9 = arith.constant dense<0.000000e+00> : vector<5x10xf32>
    %22 = tpu.matmul %19, %0, %cst_9 {dimension_numbers = #tpu.dot_dimension_numbers<[1], [0], [0], [1], [0, 0, 1, 1], [], []>} : vector<5x10xf32>, vector<10x10xf32>, vector<5x10xf32> -> vector<5x10xf32>
    %23 = arith.addf %21, %22 : vector<5x10xf32>
    %24 = math.tanh %23 : vector<5x10xf32>
    %25 = vector.extract_strided_slice %13 {offsets = [2, 0, 0], sizes = [1, 5, 10], strides = [1, 1, 1]} : vector<10x5x10xf32> to vector<1x5x10xf32>
    %26 = vector.shape_cast %25 : vector<1x5x10xf32> to vector<5x10xf32>
    %cst_10 = arith.constant dense<0.000000e+00> : vector<5x10xf32>
    %27 = tpu.matmul %24, %0, %cst_10 {dimension_numbers = #tpu.dot_dimension_numbers<[1], [0], [0], [1], [0, 0, 1, 1], [], []>} : vector<5x10xf32>, vector<10x10xf32>, vector<5x10xf32> -> vector<5x10xf32>
    %28 = arith.addf %26, %27 : vector<5x10xf32>
    %29 = math.tanh %28 : vector<5x10xf32>
    %30 = vector.extract_strided_slice %13 {offsets = [3, 0, 0], sizes = [1, 5, 10], strides = [1, 1, 1]} : vector<10x5x10xf32> to vector<1x5x10xf32>
    %31 = vector.shape_cast %30 : vector<1x5x10xf32> to vector<5x10xf32>
    %cst_11 = arith.constant dense<0.000000e+00> : vector<5x10xf32>
    %32 = tpu.matmul %29, %0, %cst_11 {dimension_numbers = #tpu.dot_dimension_numbers<[1], [0], [0], [1], [0, 0, 1, 1], [], []>} : vector<5x10xf32>, vector<10x10xf32>, vector<5x10xf32> -> vector<5x10xf32>
    %33 = arith.addf %31, %32 : vector<5x10xf32>
    %34 = math.tanh %33 : vector<5x10xf32>
    %35 = vector.extract_strided_slice %13 {offsets = [4, 0, 0], sizes = [1, 5, 10], strides = [1, 1, 1]} : vector<10x5x10xf32> to vector<1x5x10xf32>
    %36 = vector.shape_cast %35 : vector<1x5x10xf32> to vector<5x10xf32>
    %cst_12 = arith.constant dense<0.000000e+00> : vector<5x10xf32>
    %37 = tpu.matmul %34, %0, %cst_12 {dimension_numbers = #tpu.dot_dimension_numbers<[1], [0], [0], [1], [0, 0, 1, 1], [], []>} : vector<5x10xf32>, vector<10x10xf32>, vector<5x10xf32> -> vector<5x10xf32>
    %38 = arith.addf %36, %37 : vector<5x10xf32>
    %39 = math.tanh %38 : vector<5x10xf32>
    %40 = vector.extract_strided_slice %13 {offsets = [5, 0, 0], sizes = [1, 5, 10], strides = [1, 1, 1]} : vector<10x5x10xf32> to vector<1x5x10xf32>
    %41 = vector.shape_cast %40 : vector<1x5x10xf32> to vector<5x10xf32>
    %cst_13 = arith.constant dense<0.000000e+00> : vector<5x10xf32>
    %42 = tpu.matmul %39, %0, %cst_13 {dimension_numbers = #tpu.dot_dimension_numbers<[1], [0], [0], [1], [0, 0, 1, 1], [], []>} : vector<5x10xf32>, vector<10x10xf32>, vector<5x10xf32> -> vector<5x10xf32>
    %43 = arith.addf %41, %42 : vector<5x10xf32>
    %44 = math.tanh %43 : vector<5x10xf32>
    %45 = vector.extract_strided_slice %13 {offsets = [6, 0, 0], sizes = [1, 5, 10], strides = [1, 1, 1]} : vector<10x5x10xf32> to vector<1x5x10xf32>
    %46 = vector.shape_cast %45 : vector<1x5x10xf32> to vector<5x10xf32>
    %cst_14 = arith.constant dense<0.000000e+00> : vector<5x10xf32>
    %47 = tpu.matmul %44, %0, %cst_14 {dimension_numbers = #tpu.dot_dimension_numbers<[1], [0], [0], [1], [0, 0, 1, 1], [], []>} : vector<5x10xf32>, vector<10x10xf32>, vector<5x10xf32> -> vector<5x10xf32>
    %48 = arith.addf %46, %47 : vector<5x10xf32>
    %49 = math.tanh %48 : vector<5x10xf32>
    %50 = vector.extract_strided_slice %13 {offsets = [7, 0, 0], sizes = [1, 5, 10], strides = [1, 1, 1]} : vector<10x5x10xf32> to vector<1x5x10xf32>
    %51 = vector.shape_cast %50 : vector<1x5x10xf32> to vector<5x10xf32>
    %cst_15 = arith.constant dense<0.000000e+00> : vector<5x10xf32>
    %52 = tpu.matmul %49, %0, %cst_15 {dimension_numbers = #tpu.dot_dimension_numbers<[1], [0], [0], [1], [0, 0, 1, 1], [], []>} : vector<5x10xf32>, vector<10x10xf32>, vector<5x10xf32> -> vector<5x10xf32>
    %53 = arith.addf %51, %52 : vector<5x10xf32>
    %54 = math.tanh %53 : vector<5x10xf32>
    %55 = vector.extract_strided_slice %13 {offsets = [8, 0, 0], sizes = [1, 5, 10], strides = [1, 1, 1]} : vector<10x5x10xf32> to vector<1x5x10xf32>
    %56 = vector.shape_cast %55 : vector<1x5x10xf32> to vector<5x10xf32>
    %cst_16 = arith.constant dense<0.000000e+00> : vector<5x10xf32>
    %57 = tpu.matmul %54, %0, %cst_16 {dimension_numbers = #tpu.dot_dimension_numbers<[1], [0], [0], [1], [0, 0, 1, 1], [], []>} : vector<5x10xf32>, vector<10x10xf32>, vector<5x10xf32> -> vector<5x10xf32>
    %58 = arith.addf %56, %57 : vector<5x10xf32>
    %59 = math.tanh %58 : vector<5x10xf32>
    %60 = vector.extract_strided_slice %13 {offsets = [9, 0, 0], sizes = [1, 5, 10], strides = [1, 1, 1]} : vector<10x5x10xf32> to vector<1x5x10xf32>
    %61 = vector.shape_cast %60 : vector<1x5x10xf32> to vector<5x10xf32>
    %cst_17 = arith.constant dense<0.000000e+00> : vector<5x10xf32>
    %62 = tpu.matmul %59, %0, %cst_17 {dimension_numbers = #tpu.dot_dimension_numbers<[1], [0], [0], [1], [0, 0, 1, 1], [], []>} : vector<5x10xf32>, vector<10x10xf32>, vector<5x10xf32> -> vector<5x10xf32>
    %63 = arith.addf %61, %62 : vector<5x10xf32>
    %64 = math.tanh %63 : vector<5x10xf32>
    %65 = vector.shape_cast %19 : vector<5x10xf32> to vector<1x5x10xf32>
    %66 = vector.shape_cast %24 : vector<5x10xf32> to vector<1x5x10xf32>
    %67 = vector.shape_cast %29 : vector<5x10xf32> to vector<1x5x10xf32>
    %68 = vector.shape_cast %34 : vector<5x10xf32> to vector<1x5x10xf32>
    %69 = vector.shape_cast %39 : vector<5x10xf32> to vector<1x5x10xf32>
    %70 = vector.shape_cast %44 : vector<5x10xf32> to vector<1x5x10xf32>
    %71 = vector.shape_cast %49 : vector<5x10xf32> to vector<1x5x10xf32>
    %72 = vector.shape_cast %54 : vector<5x10xf32> to vector<1x5x10xf32>
    %73 = vector.shape_cast %59 : vector<5x10xf32> to vector<1x5x10xf32>
    %74 = vector.shape_cast %64 : vector<5x10xf32> to vector<1x5x10xf32>
    %75 = tpu.concatenate %65, %66, %67, %68, %69, %70, %71, %72, %73, %74 in 0 : vector<1x5x10xf32>, vector<1x5x10xf32>, vector<1x5x10xf32>, vector<1x5x10xf32>, vector<1x5x10xf32>, vector<1x5x10xf32>, vector<1x5x10xf32>, vector<1x5x10xf32>, vector<1x5x10xf32>, vector<1x5x10xf32> -> vector<10x5x10xf32>
    %76 = vector.shape_cast %3 : vector<1x10xf32> to vector<1x1x10xf32>
    %77 = vector.broadcast %76 : vector<1x1x10xf32> to vector<10x5x10xf32>
    %78 = arith.mulf %75, %77 : vector<10x5x10xf32>
    %cst_18 = arith.constant dense<0.000000e+00> : vector<10x5xf32>
    %79 = vector.multi_reduction <add>, %78, %cst_18 [2] : vector<10x5x10xf32> to vector<10x5xf32>
    %80 = vector.broadcast %4 : vector<1x1xf32> to vector<10x5xf32>
    %81 = arith.addf %79, %80 : vector<10x5xf32>
    %82 = tpu.transpose %81, [1, 0] : vector<10x5xf32> -> vector<5x10xf32>
    %c0_19 = arith.constant 0 : index
    %c0_20 = arith.constant 0 : index
    %83 = vector.load %arg3[%c0_19, %c0_20] : memref<5x10xf32, #tpu.memory_space<vmem>>, vector<5x10xf32>
    tpu.vector_store %arg3[%c0_19, %c0_20], %82 {strides = array<i32>} : memref<5x10xf32, #tpu.memory_space<vmem>>, vector<5x10xf32>,
    return
  }
}

</mosaic_0001>

<bundles_post_ra>
// kernel: tpu_custom_call.1
= control target key start
LH: loop header
LB: loop body
LE: loop exit
PB: predicated region body
PF: predicated region fallthrough
CT: control target
= control target key end

     0   :  { %vm126_vm0 = vcmask 1041408   ;;  %v23_v2 = vlaneseq  ;;  %v1266_v3 = vmov 0.0|0.0   ;;  %vm1267_vm1 = vmmov 1   ;;  %s1468_s0 = inlined_call_operand.vmem [shape: f32[10,5], index: 0, kind: input, shape index: {}]   ;;  %s1469_s1 = inlined_call_operand.vmem [shape: f32[5,10], index: 1, kind: input, shape index: {}]   ;;  %s1470_s2 = inlined_call_operand.vmem [shape: f32[14,10], index: 2, kind: input, shape index: {}]   ;;  %s1471_s3 = inlined_call_operand.hbm [shape: f32[5,10], index: 3, kind: output, shape index: {}]  }
   0x1   :  { %v15_v0 = vld [vmem:[%s1470_s2] sm:$0xff]  ;;  %v16_v1 = vld [vmem:[%s1470_s2 + $0x8] sm:$0x3]  ;;  %1175 = vmatprep.subr.bf16.mxu0 %v1266_v3  ;;  %vm1300_vm2 = vmpackc.low %vm126_vm0, %vm1267_vm1  ;;  %1179 = vmatprep.subr.bf16.mxu1 %v1266_v3  ;;  %vm1268_vm3 = vmmov 0   ;;  %v1269_v6 = vmov 0.0   ;;  %vm122_vm4 = vcmask 80896  }
   0x2   :  { %v1298_v4 = vpack.c.bf16 %v16_v1, %v15_v0  ;;  %1109 = vmatprep.mubr.msk.f32.mxu0 %vm1268_vm3, %v1269_v6  ;;  %v1308_v7 = vshrl.u32 %v23_v2, 7  ;;  %1116 = vmatprep.mubr.msk.f32.mxu1 %vm1268_vm3, %v1269_v6  ;;  %v121_v8 = vld [vmem:[%s1469_s1] sm:$0x1f] }
   0x3   :  { %v21_v9 = vld [vmem:[%s1468_s0] sm:$0xff] }
   0x4   :  { %1178 = vmatpush3.bf16.msk.msra.mxu0 %vm1300_vm2, %v1298_v4  ;;  %1182 = vmatpush3.bf16.msk.msra.mxu1 %vm1300_vm2, %v1298_v4 }
   0x5   :  { %8 = vsyncpa [#allocation3], 0  ;;  %v25_v10 = vsub.s32 0, %v1308_v7  ;;  %v32_v11 = vsub.s32 1, %v1308_v7  ;;  %1183 = vmatprep.subr.bf16.mxu0 %v1266_v3  ;;  %1187 = vmatprep.subr.bf16.mxu1 %v1266_v3  ;;  %v53_v14 = vsub.s32 4, %v1308_v7  ;;  %v67_v16 = vsub.s32 6, %v1308_v7 }
   0x6   :  { %v22_v18 = vld [vmem:[%s1468_s0 + $0x8] sm:$0x3]  ;;  %v20_v20 = vld [vmem:[%s1470_s2 + $0xd] sm:$0x1]  ;;  %v1346_v22 = vld [vmem:[%s1470_s2 + $0xa] ss:$0 sm:$0xff] }
   0x7   :  { %1110 = vmatmul.mubr.msk.f32.vlgmr.msra.gmra.mrb[0].mxu0 %vm122_vm4, %v121_v8  ;;  %v26_v12 = vrot.slane %v21_v9, %v25_v10  ;;  %v33_v13 = vrot.slane %v21_v9, %v32_v11  ;;  %v54_v15 = vrot.slane %v21_v9, %v53_v14  ;;  %v68_v17 = vrot.slane %v21_v9, %v67_v16  ;;  %v1352_v24 = vld [vmem:[%s1470_s2 + $0xb] ss:$0 sm:$0xff]  ;;  %v1358_v29 = vld [vmem:[%s1470_s2 + $0xc] ss:$0 sm:$0xff]  ;;  %s1270_s28 = smov [#allocation2]  }
   0x8   :  { %1186 = vmatpush3.bf16.msk.msra.mxu0 %vm1300_vm2, %v1298_v4  ;;  %1123 = vmatprep.mubr.msk.f32.mxu0 %vm1268_vm3, %v1269_v6  ;;  %v82_v19 = vrot.slane %v22_v18, %v25_v10  ;;  %1215 = vpush %v20_v20  ;;  %vm891_vm5 = vcmask 77824   ;;  %v39_v33 = vsub.s32 2, %v1308_v7  ;;  %v46_v34 = vsub.s32 3, %v1308_v7  ;;  %s1044_s29 = sshll.u32 %s1270_s28, 4  ;;  %s1045_s29 = int_to_ptr.vmem [resolvable:$true] %s1044_s29 }
   0x9   :  { %28 = vbcast.lane.b32.xlu0 %v26_v12, 256  ;;  %1191 = vmatprep.subr.bf16.mxu0 %v1266_v3  ;;  %v60_v37 = vsub.s32 5, %v1308_v7  ;;  %v74_v39 = vsub.s32 7, %v1308_v7  ;;  %v89_v41 = vrot.slane %v22_v18, %v32_v11  ;;  %vm988_vm6 = vcmask 1041409   ;;  %s1242_s30 = scalar_lea.vmem %s1045_s29, 128  ;;  %p1247_p1 = scmp.lt.s32.totalorder %s1045_s29, %s1045_s29 }
   0xa   :  { %v40_v35 = vrot.slane %v21_v9, %v39_v33  ;;  %v47_v36 = vrot.slane %v21_v9, %v46_v34  ;;  %vm990_vm7 = vcmask 1042434   ;;  %vm992_vm8 = vcmask 1043459   ;;  %p1243_p0 = scmp.ne.s32.totalorder %s1045_s29, %s1242_s30  ;;  %p1248_p2 = scmp.lt.s32.totalorder %s1242_s30, %s1242_s30 }
   0xb   :  { %v61_v38 = vrot.slane %v21_v9, %v60_v37  ;;  %v75_v40 = vrot.slane %v21_v9, %v74_v39  ;;  %vm994_vm9 = vcmask 1044484   ;;  %vm996_vm10 = vcmask 1045509  }
   0xc   :  { %42 = vbcast.lane.b32.xlu1 %v40_v35, 256  ;;  %vm998_vm11 = vcmask 1046534   ;;  %vm1000_vm12 = vcmask 1047559   ;;  %p1249_p3 = por %p1248_p2, %p1247_p1 }
   0xd   :  { %35 = vbcast.lane.b32.xlu0 %v33_v13, 256 }
   0xe   :  { %p1250_p4 = pnand %p1249_p3, %p1243_p0 }
  0x10   :  { %49 = vbcast.lane.b32.xlu1 %v47_v36, 256 }
  0x11   :  { %56 = vbcast.lane.b32.xlu0 %v54_v15, 256 }
  0x14   :  { %63 = vbcast.lane.b32.xlu1 %v61_v38, 256 }
  0x15   :  { %70 = vbcast.lane.b32.xlu0 %v68_v17, 256 }
  0x18   :  { %77 = vbcast.lane.b32.xlu1 %v75_v40, 256 }
  0x19   :  { %84 = vbcast.lane.b32.xlu0 %v82_v19, 256 }
  0x1c   :  { %91 = vbcast.lane.b32.xlu1 %v89_v41, 256 }
  0x39   :  { %s1216_s2 = spop %1215 }
  0x7b   :  { %v29_v21 = vpop.permute.xlu0 %28 }
  0x7c   :  { %v97_v23 = vmul.f32 %v1346_v22, %v29_v21 }
  0x7e   :  { %v111_v25 = vadd.f32 %v1352_v24, %v97_v23  ;;  %v43_v51 = vpop.permute.xlu1 %42 }
  0x7f   :  { %v36_v42 = vpop.permute.xlu0 %35  ;;  %v99_v52 = vmul.f32 %v1346_v22, %v43_v51 }
  0x80   :  { %v98_v43 = vmul.f32 %v1346_v22, %v36_v42 }
  0x81   :  { %v113_v53 = vadd.f32 %v1352_v24, %v99_v52 }
  0x82   :  { %v112_v44 = vadd.f32 %v1352_v24, %v98_v43  ;;  %v50_v60 = vpop.permute.xlu1 %49 }
  0x83   :  { %v100_v61 = vmul.f32 %v1346_v22, %v50_v60  ;;  %v57_v11 = vpop.permute.xlu0 %56  ;;  %v947_v60 = vand.u32 127, %v23_v2 }
  0x84   :  { %v101_v12 = vmul.f32 %v1346_v22, %v57_v11 }
  0x85   :  { %v114_v62 = vadd.f32 %v1352_v24, %v100_v61 }
  0x86   :  { %v115_v13 = vadd.f32 %v1352_v24, %v101_v12  ;;  %v64_v20 = vpop.permute.xlu1 %63 }
  0x87   :  { %v102_v21 = vmul.f32 %v1346_v22, %v64_v20 }
  0x89   :  { %v116_v23 = vadd.f32 %v1352_v24, %v102_v21 }
  0x8a   :  { %v78_v40 = vpop.permute.xlu1 %77 }
  0x8b   :  { %v104_v41 = vmul.f32 %v1346_v22, %v78_v40 }
  0x8d   :  { %v118_v42 = vadd.f32 %v1352_v24, %v104_v41 }
  0xda   :  { %v196_v26 = vpop.f32.mrb[0].mxu0 }
  0xdb   :  { %v200_v27 = vadd.f32 %v196_v26, %v111_v25  ;;  %v1111_v28 = vpop.f32.mrb[1].mxu0 }
  0xdd   :  { %1222 = vtanh.f32 %v200_v27 }
  0xe7   :  { %v1223_v30 = vpop.eup %1222 }
  0xe8   :  { %1117 = vmatmul.mubr.msk.f32.vlgmr.msra.gmra.mrb[0].mxu1 %vm122_vm4, %v1223_v30  ;;  %v881_v31 = vmul.f32 %v1223_v30, %v1358_v29 }
  0xe9   :  { %1190 = vmatpush3.bf16.msk.msra.mxu1 %vm1300_vm2, %v1298_v4  ;;  %1130 = vmatprep.mubr.msk.f32.mxu1 %vm1268_vm3, %v1269_v6 }
  0xea   :  { %v892_v32 = vsel %vm891_vm5, %v881_v31, 0.0  ;;  %1195 = vmatprep.subr.bf16.mxu1 %v1266_v3  ;;  %v71_v31 = vpop.permute.xlu0 %70 }
  0xeb   :  { %893 = vadd.xlane.f32.xlu0 %v892_v32  ;;  %v103_v32 = vmul.f32 %v1346_v22, %v71_v31 }
  0xed   :  { %v117_v33 = vadd.f32 %v1352_v24, %v103_v32 }
 0x1bb   :  { %v271_v45 = vpop.f32.mrb[0].mxu1 }
 0x1bc   :  { %v275_v46 = vadd.f32 %v271_v45, %v112_v44  ;;  %v1118_v47 = vpop.f32.mrb[1].mxu1 }
 0x1be   :  { %1224 = vtanh.f32 %v275_v46 }
 0x1c8   :  { %v1225_v48 = vpop.eup %1224 }
 0x1c9   :  { %1124 = vmatmul.mubr.msk.f32.vlgmr.msra.gmra.mrb[2].mxu0 %vm122_vm4, %v1225_v48  ;;  %v882_v49 = vmul.f32 %v1225_v48, %v1358_v29 }
 0x1ca   :  { %1194 = vmatpush3.bf16.msk.msra.mxu0 %vm1300_vm2, %v1298_v4  ;;  %1137 = vmatprep.mubr.msk.f32.mxu0 %vm1268_vm3, %v1269_v6 }
 0x1cb   :  { %v895_v50 = vsel %vm891_vm5, %v882_v49, 0.0  ;;  %1199 = vmatprep.subr.bf16.mxu0 %v1266_v3 }
 0x1cc   :  { %896 = vadd.xlane.f32.xlu1 %v895_v50 }
 0x29c   :  { %v346_v54 = vpop.f32.mrb[2].mxu0 }
 0x29d   :  { %v350_v55 = vadd.f32 %v346_v54, %v113_v53  ;;  %v1125_v56 = vpop.f32.mrb[3].mxu0 }
 0x29e   :  { %v92_v56 = vpop.permute.xlu1 %91 }
 0x29f   :  { %1226 = vtanh.f32 %v350_v55  ;;  %v106_v32 = vmul.f32 %v1346_v22, %v92_v56 }
 0x2a9   :  { %v1227_v57 = vpop.eup %1226 }
 0x2aa   :  { %1131 = vmatmul.mubr.msk.f32.vlgmr.msra.gmra.mrb[2].mxu1 %vm122_vm4, %v1227_v57  ;;  %v883_v58 = vmul.f32 %v1227_v57, %v1358_v29 }
 0x2ab   :  { %1198 = vmatpush3.bf16.msk.msra.mxu1 %vm1300_vm2, %v1298_v4  ;;  %1144 = vmatprep.mubr.msk.f32.mxu1 %vm1268_vm3, %v1269_v6 }
 0x2ac   :  { %v898_v59 = vsel %vm891_vm5, %v883_v58, 0.0  ;;  %1203 = vmatprep.subr.bf16.mxu1 %v1266_v3  ;;  %v897_v58 = vpop.xlane.xlu1 %896 }
 0x2ad   :  { %899 = vadd.xlane.f32.xlu0 %v898_v59 }
 0x37d   :  { %v421_v63 = vpop.f32.mrb[2].mxu1 }
 0x37e   :  { %v425_v0 = vadd.f32 %v421_v63, %v114_v62  ;;  %v1132_v1 = vpop.f32.mrb[3].mxu1  ;;  %v924_v62 = vstv %s1216_s2 }
 0x380   :  { %1228 = vtanh.f32 %v425_v0  ;;  %v927_v0 = vadd.f32 %v924_v62, %v897_v58 }
 0x38a   :  { %v1229_v8 = vpop.eup %1228 }
 0x38b   :  { %1138 = vmatmul.mubr.msk.f32.vlgmr.msra.gmra.mrb[4].mxu0 %vm122_vm4, %v1229_v8  ;;  %v884_v9 = vmul.f32 %v1229_v8, %v1358_v29  ;;  %v950_v8 = vsub.s32 %v947_v60, %v1308_v7 }
 0x38c   :  { %1202 = vmatpush3.bf16.msk.msra.mxu0 %vm1300_vm2, %v1298_v4  ;;  %1151 = vmatprep.mubr.msk.f32.mxu0 %vm1268_vm3, %v1269_v6 }
 0x38d   :  { %v901_v10 = vsel %vm891_vm5, %v884_v9, 0.0  ;;  %1207 = vmatprep.subr.bf16.mxu0 %v1266_v3 }
 0x38e   :  { %902 = vadd.xlane.f32.xlu0 %v901_v10 }
 0x45e   :  { %v496_v14 = vpop.f32.mrb[4].mxu0 }
 0x45f   :  { %v500_v15 = vadd.f32 %v496_v14, %v115_v13  ;;  %v1139_v16 = vpop.f32.mrb[5].mxu0  ;;  %v955_v14 = vrot.slane %v927_v0, %v950_v8 }
 0x461   :  { %1230 = vtanh.f32 %v500_v15 }
 0x46b   :  { %v1231_v17 = vpop.eup %1230 }
 0x46c   :  { %1145 = vmatmul.mubr.msk.f32.vlgmr.msra.gmra.mrb[4].mxu1 %vm122_vm4, %v1231_v17  ;;  %v885_v18 = vmul.f32 %v1231_v17, %v1358_v29 }
 0x46d   :  { %1206 = vmatpush3.bf16.msk.msra.mxu1 %vm1300_vm2, %v1298_v4  ;;  %1158 = vmatprep.mubr.msk.f32.mxu1 %vm1268_vm3, %v1269_v6 }
 0x46e   :  { %v904_v19 = vsel %vm891_vm5, %v885_v18, 0.0  ;;  %1211 = vmatprep.subr.bf16.mxu1 %v1266_v3 }
 0x46f   :  { %905 = vadd.xlane.f32.xlu1 %v904_v19 }
 0x4fc   :  { %v906_v61 = vpop.xlane.xlu1 %905 }
 0x4fd   :  { %v930_v12 = vadd.f32 %v924_v62, %v906_v61 }
 0x4ff   :  { %v967_v20 = vrot.slane %v930_v12, %v950_v8 }
 0x53f   :  { %v571_v25 = vpop.f32.mrb[4].mxu1 }
 0x540   :  { %v575_v26 = vadd.f32 %v571_v25, %v116_v23  ;;  %v1146_v27 = vpop.f32.mrb[5].mxu1 }
 0x542   :  { %1232 = vtanh.f32 %v575_v26 }
 0x54c   :  { %v1233_v28 = vpop.eup %1232 }
 0x54d   :  { %1152 = vmatmul.mubr.msk.f32.vlgmr.msra.gmra.mrb[6].mxu0 %vm122_vm4, %v1233_v28  ;;  %v886_v30 = vmul.f32 %v1233_v28, %v1358_v29 }
 0x54e   :  { %1210 = vmatpush3.bf16.msk.msra.mxu0 %vm1300_vm2, %v1298_v4  ;;  %1165 = vmatprep.mubr.msk.f32.mxu0 %vm1268_vm3, %v1269_v6 }
 0x54f   :  { %v907_v3 = vsel %vm891_vm5, %v886_v30, 0.0 }
 0x550   :  { %908 = vadd.xlane.f32.xlu0 %v907_v3 }
 0x620   :  { %v646_v34 = vpop.f32.mrb[6].mxu0 }
 0x621   :  { %v650_v35 = vadd.f32 %v646_v34, %v117_v33  ;;  %v1153_v36 = vpop.f32.mrb[7].mxu0  ;;  %v120_v33 = vadd.f32 %v1352_v24, %v106_v32 }
 0x623   :  { %1234 = vtanh.f32 %v650_v35 }
 0x62d   :  { %v1235_v37 = vpop.eup %1234 }
 0x62e   :  { %1159 = vmatmul.mubr.msk.f32.vlgmr.msra.gmra.mrb[6].mxu1 %vm122_vm4, %v1235_v37  ;;  %v887_v38 = vmul.f32 %v1235_v37, %v1358_v29 }
 0x62f   :  { %1214 = vmatpush3.bf16.msk.msra.mxu1 %vm1300_vm2, %v1298_v4  ;;  %1172 = vmatprep.mubr.msk.f32.mxu1 %vm1268_vm3, %v1269_v6  ;;  %v85_v6 = vpop.permute.xlu0 %84 }
 0x630   :  { %v910_v39 = vsel %vm891_vm5, %v887_v38, 0.0  ;;  %v105_v47 = vmul.f32 %v1346_v22, %v85_v6 }
 0x631   :  { %911 = vadd.xlane.f32.xlu1 %v910_v39 }
 0x632   :  { %v119_v48 = vadd.f32 %v1352_v24, %v105_v47 }
 0x633   :  { %v894_v55 = vpop.xlane.xlu0 %893 }
 0x634   :  { %v926_v9 = vadd.f32 %v924_v62, %v894_v55 }
 0x636   :  { %v951_v18 = vrot.slane %v926_v9, %v950_v8 }
 0x637   :  { %v900_v57 = vpop.xlane.xlu0 %899 }
 0x638   :  { %v928_v1 = vadd.f32 %v924_v62, %v900_v57  ;;  %v989_v21 = vsel %vm988_vm6, %v955_v14, %v951_v18 }
 0x63a   :  { %v959_v16 = vrot.slane %v928_v1, %v950_v8 }
 0x63b   :  { %v903_v59 = vpop.xlane.xlu0 %902 }
 0x63c   :  { %v929_v10 = vadd.f32 %v924_v62, %v903_v59  ;;  %v991_v23 = vsel %vm990_vm7, %v959_v16, %v989_v21 }
 0x63e   :  { %v963_v2 = vrot.slane %v929_v10, %v950_v8 }
 0x63f   :  { %v909_v63 = vpop.xlane.xlu0 %908 }
 0x640   :  { %v931_v15 = vadd.f32 %v924_v62, %v909_v63  ;;  %v993_v26 = vsel %vm992_vm8, %v963_v2, %v991_v23 }
 0x641   :  { %v995_v28 = vsel %vm994_vm9, %v967_v20, %v993_v26 }
 0x642   :  { %v971_v7 = vrot.slane %v931_v15, %v950_v8 }
 0x644   :  { %v997_v30 = vsel %vm996_vm10, %v971_v7, %v995_v28 }
 0x6be   :  { %v912_v11 = vpop.xlane.xlu1 %911 }
 0x6bf   :  { %v932_v17 = vadd.f32 %v924_v62, %v912_v11 }
 0x6c1   :  { %v975_v25 = vrot.slane %v932_v17, %v950_v8 }
 0x6c3   :  { %v999_v3 = vsel %vm998_vm11, %v975_v25, %v997_v30 }
 0x701   :  { %v721_v43 = vpop.f32.mrb[6].mxu1 }
 0x702   :  { %v725_v44 = vadd.f32 %v721_v43, %v118_v42  ;;  %v1160_v45 = vpop.f32.mrb[7].mxu1 }
 0x704   :  { %1236 = vtanh.f32 %v725_v44 }
 0x70e   :  { %v1237_v46 = vpop.eup %1236 }
 0x70f   :  { %1166 = vmatmul.mubr.msk.f32.vlgmr.msra.gmra.mrb[8].mxu0 %vm122_vm4, %v1237_v46  ;;  %v888_v4 = vmul.f32 %v1237_v46, %v1358_v29 }
 0x711   :  { %v913_v5 = vsel %vm891_vm5, %v888_v4, 0.0 }
 0x712   :  { %914 = vadd.xlane.f32.xlu0 %v913_v5 }
 0x79f   :  { %v915_v13 = vpop.xlane.xlu0 %914 }
 0x7a0   :  { %v933_v19 = vadd.f32 %v924_v62, %v915_v13 }
 0x7a2   :  { %v979_v27 = vrot.slane %v933_v19, %v950_v8 }
 0x7a4   :  { %v1001_v31 = vsel %vm1000_vm12, %v979_v27, %v999_v3 }
 0x7e2   :  { %v796_v49 = vpop.f32.mrb[8].mxu0 }
 0x7e3   :  { %v800_v50 = vadd.f32 %v796_v49, %v119_v48  ;;  %v1167_v51 = vpop.f32.mrb[9].mxu0 }
 0x7e5   :  { %1238 = vtanh.f32 %v800_v50 }
 0x7ef   :  { %v1239_v52 = vpop.eup %1238 }
 0x7f0   :  { %1173 = vmatmul.mubr.msk.f32.vlgmr.msra.gmra.mrb[8].mxu1 %vm122_vm4, %v1239_v52  ;;  %v889_v53 = vmul.f32 %v1239_v52, %v1358_v29 }
 0x7f2   :  { %v916_v54 = vsel %vm891_vm5, %v889_v53, 0.0 }
 0x7f3   :  { %917 = vadd.xlane.f32.xlu1 %v916_v54 }
 0x826   :  { %1005 = vxpose.xlu1.b32.start [1/2] (short) (narrow) %v1001_v31, 8 }
 0x880   :  { %v918_v40 = vpop.xlane.xlu1 %917 }
 0x881   :  { %v934_v41 = vadd.f32 %v924_v62, %v918_v40 }
 0x883   :  { %v983_v44 = vrot.slane %v934_v41, %v950_v8 }
 0x8c3   :  { %v871_v34 = vpop.f32.mrb[8].mxu1 }
 0x8c4   :  { %v875_v35 = vadd.f32 %v871_v34, %v120_v33  ;;  %v1174_v36 = vpop.f32.mrb[9].mxu1 }
 0x8c6   :  { %1240 = vtanh.f32 %v875_v35 }
 0x8d0   :  { %v1241_v37 = vpop.eup %1240 }
 0x8d1   :  { %v890_v38 = vmul.f32 %v1241_v37, %v1358_v29 }
 0x8d3   :  { %v919_v39 = vsel %vm891_vm5, %v890_v38, 0.0 }
 0x8d4   :  { %920 = vadd.xlane.f32.xlu0 %v919_v39 }
 0x961   :  { %v921_v42 = vpop.xlane.xlu0 %920 }
 0x962   :  { %v935_v43 = vadd.f32 %v924_v62, %v921_v42 }
 0x964   :  { %v987_v45 = vrot.slane %v935_v43, %v950_v8 }
 0x966   :  { %v1002_v22 = vsel %vm988_vm6, %v987_v45, %v983_v44 }
 0x967   :  { %1006 = vxpose.xlu1.b32.end [2/2] (short) (narrow) %v1002_v22, 8 }
 0x9e3   :  { %v1021_v24 = vpop.trf.xlu1 }
 0x9e4   :  { %1037 = vst.msk [vmem:[#allocation2] sm:$0x1f] %vm891_vm5, %v1021_v24 }
 0x9e5   :  { %1253 = shalt.err (!%p1250_p4)
}
 0x9e6   :  { %s1254_s6 = scalar_lea.hbm %s1471_s3, 128 }
 0x9e7   :  { %p1255_p5 = scmp.ne.s32.totalorder %s1471_s3, %s1254_s6  ;;  %p1258_p6 = scmp.lt.u32.totalorder %s1254_s6, %s1471_s3 }
 0x9e9   :  { %p1260_p7 = pnand %p1258_p6, %p1255_p5 }
 0x9eb   :  { %1263 = shalt.err (!%p1260_p7)
}
 0x9ec   :  { %1047 = dma.vmem_to_hbm [thread:$0]  %s1045_s29, 128, %s1471_s3, [#allocation3]  }
 0x9ed   :  { %1264 = dma.done.wait [#allocation3], 128  }
 0x9ee   :  { %1265 = vsyncadd [#allocation3], 4294967168 }
 0x9ef   :  { %1051 = vsyncpa [#allocation3], 1 }

</bundles_post_ra>
